<compile_context>
chip_gen: v7x
topology: tpu7x:2x2x1
jax: 0.10.0
libtpu: 0.0.40
codegen_flags: <defaults>
</compile_context>

<pallas_src>
import jax
import jax.numpy as jnp
from jax.experimental import pallas as pl
from jax.experimental.pallas import tpu as pltpu


def _frozen_bn_kernel(scale_ref, bias_ref, x_ref, o_ref):
    # scale/bias tiles are (rows_blk, 1); broadcast against (rows_blk, lane_blk).
    x = x_ref[...].astype(jnp.float32)
    o_ref[...] = (x * scale_ref[...] + bias_ref[...]).astype(o_ref.dtype)


def _round_up(a, b):
    return (a + b - 1) // b * b


def _vmem_capacity_bytes():
    try:
        return int(pltpu.get_tpu_info().vmem_capacity_bytes)
    except Exception:
        return 64 << 20  # most conservative physical VMEM per TC (v7x)


def frozen_batchnorm2d(x, weight, bias, running_mean, running_var, eps=1e-5):
    """x: (N, C, H, W); weight/bias/running_mean/running_var: (C,)."""
    N, C, H, W = x.shape
    R, L = N * C, H * W
    f32 = jnp.float32
    itemsize = jnp.dtype(x.dtype).itemsize
    pack = max(8, 32 // itemsize)  # sublane pack: 8 f32, 16 bf16, 32 int8/fp8

    # Per-channel scale / folded bias (f32, computed once in the wrapper).
    scale_c = weight.astype(f32) * jax.lax.rsqrt(running_var.astype(f32) + f32(eps))
    bias_c = bias.astype(f32) - running_mean.astype(f32) * scale_c

    # Lane-dense 2-D views: x -> (N*C, H*W); per-row scale/bias -> (N*C, 1).
    x2 = x.reshape(R, L)
    scale_r = jnp.broadcast_to(scale_c[None, :], (N, C)).reshape(R, 1)
    bias_r = jnp.broadcast_to(bias_c[None, :], (N, C)).reshape(R, 1)

    # --- Block sizing: ~8 MiB data blocks, dtype-aware, within physical VMEM ---
    vmem_cap = _vmem_capacity_bytes()
    # double-buffered in + out = 4 x block; keep that within ~half of physical VMEM
    target_block_bytes = min(8 << 20, max(1 << 20, (vmem_cap // 2) // 4))

    # Lane block: prefer full L (1-D grid, unmasked lane-dense stores); only split
    # when even the minimum-row slab blows the budget, and then split evenly.
    if pack * L * itemsize <= target_block_bytes:
        lane_blk = L
    else:
        max_lane = max(128, (target_block_bytes // (pack * itemsize)) // 128 * 128)
        n_lane_blocks = pl.cdiv(L, max_lane)
        lane_blk = min(L, _round_up(pl.cdiv(L, n_lane_blocks), 128))

    rows_target = max(pack, (target_block_bytes // (lane_blk * itemsize)) // pack * pack)
    rows_blk = R if R <= rows_target else rows_target

    # v7x megacore: ensure >= 4 parallel blocks when possible (no-op on 1-TC chips).
    while pl.cdiv(R, rows_blk) * pl.cdiv(L, lane_blk) < 4 and rows_blk > pack:
        rows_blk = max(pack, (rows_blk // 2) // pack * pack)
    if rows_blk >= R:
        rows_blk = R  # full-extent block is always legal

    # Explicit scoped-VMEM limit: double-buffered in+out + scale/bias + headroom,
    # so v5e's 16 MiB / v6e-v7x's 32 MiB defaults never gate the block size.
    data_block_bytes = rows_blk * lane_blk * itemsize
    vmem_need = 2 * 2 * data_block_bytes + 2 * 2 * rows_blk * 4 + (4 << 20)
    vmem_limit = int(min(vmem_cap, max(vmem_need, 16 << 20)))

    cost = pl.CostEstimate(
        flops=2 * R * L,
        transcendentals=0,
        bytes_accessed=2 * R * L * itemsize + 8 * R)

    if lane_blk == L:
        # 1-D grid: scale/bias fetched once per row block; no masked lane tails.
        out2 = pl.pallas_call(
            _frozen_bn_kernel,
            out_shape=jax.ShapeDtypeStruct((R, L), x.dtype),
            grid=(pl.cdiv(R, rows_blk),),
            in_specs=[
                pl.BlockSpec((rows_blk, 1), lambda r: (r, 0)),        # scale
                pl.BlockSpec((rows_blk, 1), lambda r: (r, 0)),        # bias'
                pl.BlockSpec((rows_blk, L), lambda r: (r, 0)),        # x
            ],
            out_specs=pl.BlockSpec((rows_blk, L), lambda r: (r, 0)),
            compiler_params=pltpu.CompilerParams(
                dimension_semantics=("parallel",),
                vmem_limit_bytes=vmem_limit),
            cost_estimate=cost,
        )(scale_r, bias_r, x2)
    else:
        out2 = pl.pallas_call(
            _frozen_bn_kernel,
            out_shape=jax.ShapeDtypeStruct((R, L), x.dtype),
            grid=(pl.cdiv(R, rows_blk), pl.cdiv(L, lane_blk)),
            in_specs=[
                pl.BlockSpec((rows_blk, 1), lambda r, l: (r, 0)),          # scale
                pl.BlockSpec((rows_blk, 1), lambda r, l: (r, 0)),          # bias'
                pl.BlockSpec((rows_blk, lane_blk), lambda r, l: (r, l)),   # x
            ],
            out_specs=pl.BlockSpec((rows_blk, lane_blk), lambda r, l: (r, l)),
            compiler_params=pltpu.CompilerParams(
                dimension_semantics=("parallel", "parallel"),
                vmem_limit_bytes=vmem_limit),
            cost_estimate=cost,
        )(scale_r, bias_r, x2)

    return out2.reshape(N, C, H, W)


if __name__ == "__main__":
    key = jax.random.PRNGKey(0)
    kx, kw, kb, km, kv = jax.random.split(key, 5)

    N, C, H, W = 2, 4, 16, 16
    x = jax.random.normal(kx, (N, C, H, W), dtype=jnp.float32)

    # Parameter shapes follow FrozenBatchNorm2d.__init__(n=C): four (C,) buffers.
    weight = 1.0 + 0.1 * jax.random.normal(kw, (C,), dtype=jnp.float32)
    bias = 0.1 * jax.random.normal(kb, (C,), dtype=jnp.float32)
    running_mean = 0.5 * jax.random.normal(km, (C,), dtype=jnp.float32)
    running_var = jnp.abs(1.0 + 0.2 * jax.random.normal(kv, (C,), dtype=jnp.float32))

    out = frozen_batchnorm2d(x, weight, bias, running_mean, running_var)
    out = jax.block_until_ready(out)

    # Pure-JAX reference (mirrors the PyTorch forward exactly).
    eps = 1e-5
    scale = weight.reshape(1, -1, 1, 1) * jax.lax.rsqrt(
        running_var.reshape(1, -1, 1, 1) + eps)
    ref_bias = bias.reshape(1, -1, 1, 1) - running_mean.reshape(1, -1, 1, 1) * scale
    ref = x * scale + ref_bias

    assert out.shape == x.shape and out.dtype == x.dtype
    assert jnp.allclose(out, ref, atol=1e-5, rtol=1e-5), "mismatch vs reference"
    print("KERNEL_OK")
</pallas_src>

<mosaic_0001>
module attributes {stable_mosaic.version = 11 : i64} {
  func.func @_frozen_bn_kernel(%arg0: i32, %arg1: memref<8x1xf32, #tpu.memory_space<vmem>>, %arg2: memref<8x1xf32, #tpu.memory_space<vmem>>, %arg3: memref<8x256xf32, #tpu.memory_space<vmem>>, %arg4: memref<8x256xf32, #tpu.memory_space<vmem>>) attributes {dimension_semantics = [#tpu.dimension_semantics<parallel>], iteration_bounds = array<i64: 1>, scalar_prefetch = 0 : i64, scratch_operands = 0 : i64, tpu.core_type = #tpu.core_type<tc>, window_params = [{transform_indices = @transform_0, window_bounds = array<i64: 8, 1>}, {transform_indices = @transform_1, window_bounds = array<i64: 8, 1>}, {transform_indices = @transform_2, window_bounds = array<i64: 8, 256>}, {transform_indices = @transform_3, window_bounds = array<i64: 8, 256>}]} {
    %c0 = arith.constant 0 : index
    %c0_0 = arith.constant 0 : index
    %0 = vector.load %arg3[%c0, %c0_0] : memref<8x256xf32, #tpu.memory_space<vmem>>, vector<8x256xf32>
    %c0_1 = arith.constant 0 : index
    %c0_2 = arith.constant 0 : index
    %1 = vector.load %arg1[%c0_1, %c0_2] : memref<8x1xf32, #tpu.memory_space<vmem>>, vector<8x1xf32>
    %2 = vector.broadcast %1 : vector<8x1xf32> to vector<8x256xf32>
    %3 = arith.mulf %0, %2 : vector<8x256xf32>
    %c0_3 = arith.constant 0 : index
    %c0_4 = arith.constant 0 : index
    %4 = vector.load %arg2[%c0_3, %c0_4] : memref<8x1xf32, #tpu.memory_space<vmem>>, vector<8x1xf32>
    %5 = vector.broadcast %4 : vector<8x1xf32> to vector<8x256xf32>
    %6 = arith.addf %3, %5 : vector<8x256xf32>
    %c0_5 = arith.constant 0 : index
    %c0_6 = arith.constant 0 : index
    %7 = vector.load %arg4[%c0_5, %c0_6] : memref<8x256xf32, #tpu.memory_space<vmem>>, vector<8x256xf32>
    tpu.vector_store %arg4[%c0_5, %c0_6], %6 {strides = array<i32>} : memref<8x256xf32, #tpu.memory_space<vmem>>, vector<8x256xf32>,
    return
  }
  func.func @transform_0(%arg0: i32) -> (i32, i32) {
    %c0_i32 = arith.constant 0 : i32
    %c0_i32_0 = arith.constant 0 : i32
    return %arg0, %c0_i32 : i32, i32
  }
  func.func @transform_1(%arg0: i32) -> (i32, i32) {
    %c0_i32 = arith.constant 0 : i32
    %c0_i32_0 = arith.constant 0 : i32
    return %arg0, %c0_i32 : i32, i32
  }
  func.func @transform_2(%arg0: i32) -> (i32, i32) {
    %c0_i32 = arith.constant 0 : i32
    %c0_i32_0 = arith.constant 0 : i32
    return %arg0, %c0_i32 : i32, i32
  }
  func.func @transform_3(%arg0: i32) -> (i32, i32) {
    %c0_i32 = arith.constant 0 : i32
    %c0_i32_0 = arith.constant 0 : i32
    return %arg0, %c0_i32 : i32, i32
  }
}

</mosaic_0001>

<bundles_post_ra>
// kernel: tpu_custom_call.1
= control target key start
LH: loop header
LB: loop body
LE: loop exit
PB: predicated region body
PF: predicated region fallthrough
CT: control target
= control target key end

     0   :  { %s122_s0 = inlined_call_operand.vmem [shape: f32[8,1], index: 0, kind: input, shape index: {}]   ;;  %s123_s1 = inlined_call_operand.vmem [shape: f32[8,1], index: 1, kind: input, shape index: {}]   ;;  %s124_s2 = inlined_call_operand.vmem [shape: f32[8,256], index: 2, kind: input, shape index: {}]   ;;  %s125_s3 = inlined_call_operand.hbm [shape: f32[8,256], index: 3, kind: output, shape index: {}]  }
   0x1   :  { %v17_v0 = vld [vmem:[%s122_s0] sm:$0xff] }
   0x2   :  { %8 = vsyncpa [#allocation3], 0  ;;  %v76_v1 = vmov 0   ;;  %v25_v2 = vld [vmem:[%s123_s1] sm:$0xff]  ;;  %v16_v5 = vld [vmem:[%s124_s2 + $0x8] sm:$0xff]  ;;  %s77_s20 = smov [#allocation2]  }
   0x3   :  { %51 = vset.pattern.permute.xlu0 %v76_v1  ;;  %v15_v4 = vld [vmem:[%s124_s2] sm:$0xff]  ;;  %s41_s0 = sshll.u32 %s77_s20, 4  ;;  %s42_s0 = int_to_ptr.vmem [resolvable:$true] %s41_s0 }
   0x4   :  { %20 = vperm.xlu0 %51, %v17_v0   ;;  %s52_s1 = scalar_lea.vmem %s42_s0, 256  ;;  %p57_p1 = scmp.lt.s32.totalorder %s42_s0, %s42_s0 }
   0x5   :  { %p53_p0 = scmp.ne.s32.totalorder %s42_s0, %s52_s1  ;;  %p58_p2 = scmp.lt.s32.totalorder %s52_s1, %s52_s1 }
   0x7   :  { %p59_p3 = por %p58_p2, %p57_p1 }
   0x8   :  { %28 = vperm.xlu0 %51, %v25_v2  }
   0x9   :  { %p60_p4 = pnand %p59_p3, %p53_p0 }
  0x83   :  { %v21_v3 = vpop.permute.xlu0 %20 }
  0x84   :  { %v23_v6 = vmul.f32 %v21_v3, %v15_v4  ;;  %v24_v7 = vmul.f32 %v21_v3, %v16_v5 }
  0x87   :  { %v29_v8 = vpop.permute.xlu0 %28 }
  0x88   :  { %v31_v9 = vadd.f32 %v29_v8, %v23_v6  ;;  %v32_v10 = vadd.f32 %v29_v8, %v24_v7 }
  0x8a   :  { %33 = vst [vmem:[#allocation2] sm:$0xff] %v31_v9  ;;  %34 = vst [vmem:[#allocation2 + $0x8] sm:$0xff] %v32_v10 }
  0x8b   :  { %63 = shalt.err (!%p60_p4)
}
  0x8c   :  { %s64_s2 = scalar_lea.hbm %s125_s3, 256 }
  0x8d   :  { %p65_p5 = scmp.ne.s32.totalorder %s125_s3, %s64_s2  ;;  %p68_p6 = scmp.lt.u32.totalorder %s64_s2, %s125_s3 }
  0x8f   :  { %p70_p7 = pnand %p68_p6, %p65_p5 }
  0x91   :  { %73 = shalt.err (!%p70_p7)
}
  0x92   :  { %44 = dma.vmem_to_hbm [thread:$0]  %s42_s0, 256, %s125_s3, [#allocation3]  }
  0x93   :  { %74 = dma.done.wait [#allocation3], 256  }
  0x94   :  { %75 = vsyncadd [#allocation3], 4294967040 }
  0x95   :  { %48 = vsyncpa [#allocation3], 1 }

</bundles_post_ra>
